<compile_context>
chip_gen: v6e
topology: v6e:2x2x1
jax: 0.10.0
libtpu: 0.0.40
codegen_flags: <defaults>
</compile_context>

<pallas_src>
import functools

import jax
import jax.numpy as jnp
from jax.experimental import pallas as pl
from jax.experimental.pallas import tpu as pltpu


def mixed_attention_kernel(x_ref, m_ref, wq_ref, wkv_ref, fc1_ref, fc2_ref,
                           wo_ref, bo_ref, o_ref,
                           *, heads, dim_head, softmax_scale):
    n = x_ref.shape[0]
    nm = m_ref.shape[0]
    inner = heads * dim_head
    dim = o_ref.shape[1]

    x = x_ref[...]                                   # (n,  dim)
    mm = m_ref[...]                                  # (nm, dim)

    # --- projections: Q from x; K|V fused into one wide matmul (lane width 2*inner) ---
    q = jnp.dot(x, wq_ref[...], preferred_element_type=jnp.float32)      # (n,  inner)
    kv = jnp.dot(mm, wkv_ref[...], preferred_element_type=jnp.float32)   # (nm, 2*inner)

    # --- shared ChannelAttention, batched over the three tensors -------------------
    # fc1 is linear (no bias) => fc1(max_p) + fc1(avg_p) == fc1(max_p + avg_p);
    # mean's /N is folded into one scalar multiply of the column sums.
    pq = (jnp.max(q, axis=0, keepdims=True)
          + jnp.sum(q, axis=0, keepdims=True) * (1.0 / n))                # (1, inner)
    pkv = (jnp.max(kv, axis=0, keepdims=True)
           + jnp.sum(kv, axis=0, keepdims=True) * (1.0 / nm))             # (1, 2*inner)
    pooled = jnp.concatenate([pq, pkv[:, :inner], pkv[:, inner:]], axis=0)  # (3, inner)

    hidden = jnp.maximum(
        jnp.dot(pooled, fc1_ref[...], preferred_element_type=jnp.float32), 0.0)
    scales = jax.nn.sigmoid(
        jnp.dot(hidden, fc2_ref[...], preferred_element_type=jnp.float32))  # (3, inner)

    q = q * scales[0:1, :]                           # gate q
    k = kv[:, :inner] * scales[1:2, :]               # gate k
    v = kv[:, inner:] * scales[2:3, :]               # gate v

    # --- per-head attention, accumulating into the output projection ---------------
    wo = wo_ref[...]                                 # (inner, dim)
    acc = jnp.broadcast_to(bo_ref[...], (n, dim))    # output bias folded into the init

    for h in range(heads):                           # heads is static -> unrolled
        lo = h * dim_head
        hi = lo + dim_head
        qh = q[:, lo:hi]                             # (n,  d)
        kh = k[:, lo:hi]                             # (nm, d)
        vh = v[:, lo:hi]                             # (nm, d)
        s = jnp.dot(qh, kh.T, preferred_element_type=jnp.float32) * softmax_scale
        s = s - jnp.max(s, axis=-1, keepdims=True)
        e = jnp.exp(s)
        p = e * pl.reciprocal(jnp.sum(e, axis=-1, keepdims=True), approx=True)
        oh = jnp.dot(p, vh, preferred_element_type=jnp.float32)          # (n, d)
        acc = acc + jnp.dot(oh, wo[lo:hi, :], preferred_element_type=jnp.float32)

    o_ref[...] = acc


def mixed_attention(x, m, params, *, heads, dim_head):
    b, n, dim = x.shape
    nm = m.shape[1]
    inner = heads * dim_head
    hid = params["fc1"].shape[1]
    softmax_scale = float(dim) ** -0.5       # faithful to the module: dim**-0.5

    # Fuse K and V projection weights once, outside the kernel.
    wkv = jnp.concatenate([params["wk"], params["wv"]], axis=1)   # (dim, 2*inner)

    kernel = functools.partial(mixed_attention_kernel, heads=heads,
                               dim_head=dim_head, softmax_scale=softmax_scale)

    def whole(shape):
        # whole-array block, independent of the batch grid index
        return pl.BlockSpec(shape, lambda i: (0,) * len(shape))

    return pl.pallas_call(
        kernel,
        out_shape=jax.ShapeDtypeStruct((b, n, dim), jnp.float32),
        grid=(b,),
        in_specs=[
            pl.BlockSpec((None, n, dim), lambda i: (i, 0, 0)),    # x  (batch-sliced)
            pl.BlockSpec((None, nm, dim), lambda i: (i, 0, 0)),   # m  (batch-sliced)
            whole((dim, inner)),                                  # Wq
            whole((dim, 2 * inner)),                              # [Wk | Wv]
            whole((inner, hid)),                                  # CA fc1
            whole((hid, inner)),                                  # CA fc2
            whole((inner, dim)),                                  # Wo
            whole((1, dim)),                                      # bo
        ],
        out_specs=pl.BlockSpec((None, n, dim), lambda i: (i, 0, 0)),
        compiler_params=pltpu.CompilerParams(
            dimension_semantics=("parallel",)),
    )(x, m, params["wq"], wkv, params["fc1"], params["fc2"],
      params["wo"], params["bo"])


def mixed_attention_ref(x, m, params, *, heads, dim_head):
    """Pure-JAX reference mirroring the PyTorch forward (mask=None, dropout=0)."""
    b, n, dim = x.shape
    inner = heads * dim_head
    scale = float(dim) ** -0.5

    def chan_att(t):
        max_p = jnp.max(t, axis=1, keepdims=True)
        avg_p = jnp.mean(t, axis=1, keepdims=True)
        mo = jnp.squeeze(max_p, 1) @ params["fc1"]
        ao = jnp.squeeze(avg_p, 1) @ params["fc1"]
        out = jax.nn.relu(mo + ao) @ params["fc2"]
        return t * jax.nn.sigmoid(out)[:, None, :]

    q = x @ params["wq"]
    k = m @ params["wk"]
    v = m @ params["wv"]
    q, k, v = chan_att(q), chan_att(k), chan_att(v)

    def to_heads(t):
        return t.reshape(b, t.shape[1], heads, dim_head).transpose(0, 2, 1, 3)

    qh, kh, vh = to_heads(q), to_heads(k), to_heads(v)
    dots = jnp.einsum("bhid,bhjd->bhij", qh, kh) * scale
    attn = jax.nn.softmax(dots, axis=-1)
    out = jnp.einsum("bhij,bhjd->bhid", attn, vh)
    out = out.transpose(0, 2, 1, 3).reshape(b, n, inner)
    return out @ params["wo"] + params["bo"]


if __name__ == "__main__":
    # Small shapes consistent with the module: dim=32, heads=4, dim_head=8
    # -> inner_dim = 32, ChannelAttention hidden = inner_dim // 16 = 2.
    B, N, NM, DIM = 2, 8, 8, 32
    HEADS, DIM_HEAD = 4, 8
    INNER = HEADS * DIM_HEAD
    HID = INNER // 16

    key = jax.random.PRNGKey(0)
    ks = jax.random.split(key, 9)
    s = 0.05
    params = {
        "wq":  jax.random.normal(ks[0], (DIM, INNER), jnp.float32) * s,
        "wk":  jax.random.normal(ks[1], (DIM, INNER), jnp.float32) * s,
        "wv":  jax.random.normal(ks[2], (DIM, INNER), jnp.float32) * s,
        "fc1": jax.random.normal(ks[3], (INNER, HID), jnp.float32) * s,
        "fc2": jax.random.normal(ks[4], (HID, INNER), jnp.float32) * s,
        "wo":  jax.random.normal(ks[5], (INNER, DIM), jnp.float32) * s,
        "bo":  jax.random.normal(ks[6], (1, DIM), jnp.float32) * s,
    }
    x = jax.random.normal(ks[7], (B, N, DIM), jnp.float32)
    m = jax.random.normal(ks[8], (B, NM, DIM), jnp.float32)

    out = mixed_attention(x, m, params, heads=HEADS, dim_head=DIM_HEAD)
    out = jax.block_until_ready(out)

    ref = mixed_attention_ref(x, m, params, heads=HEADS, dim_head=DIM_HEAD)
    assert out.shape == (B, N, DIM)
    # Tolerance slightly loosened vs f32 reference because the softmax denominator
    # uses the EUP approximate-reciprocal path.
    assert jnp.allclose(out, ref, rtol=5e-3, atol=5e-4), "mismatch vs reference"

    print("KERNEL_OK")
</pallas_src>

<mosaic_0001>
module attributes {stable_mosaic.version = 11 : i64} {
  func.func @mixed_attention_kernel(%arg0: i32, %arg1: memref<1x8x32xf32, #tpu.memory_space<vmem>>, %arg2: memref<1x8x32xf32, #tpu.memory_space<vmem>>, %arg3: memref<32x32xf32, #tpu.memory_space<vmem>>, %arg4: memref<32x64xf32, #tpu.memory_space<vmem>>, %arg5: memref<32x2xf32, #tpu.memory_space<vmem>>, %arg6: memref<2x32xf32, #tpu.memory_space<vmem>>, %arg7: memref<32x32xf32, #tpu.memory_space<vmem>>, %arg8: memref<1x32xf32, #tpu.memory_space<vmem>>, %arg9: memref<1x8x32xf32, #tpu.memory_space<vmem>>) attributes {dimension_semantics = [#tpu.dimension_semantics<parallel>], iteration_bounds = array<i64: 2>, scalar_prefetch = 0 : i64, scratch_operands = 0 : i64, tpu.core_type = #tpu.core_type<tc>, window_params = [{transform_indices = @transform_0, window_bounds = array<i64: 1, 8, 32>}, {transform_indices = @transform_1, window_bounds = array<i64: 1, 8, 32>}, {pipeline_mode = #tpu.pipeline_mode<synchronous>, transform_indices = @transform_2, window_bounds = array<i64: 32, 32>}, {pipeline_mode = #tpu.pipeline_mode<synchronous>, transform_indices = @transform_3, window_bounds = array<i64: 32, 64>}, {pipeline_mode = #tpu.pipeline_mode<synchronous>, transform_indices = @transform_4, window_bounds = array<i64: 32, 2>}, {pipeline_mode = #tpu.pipeline_mode<synchronous>, transform_indices = @transform_5, window_bounds = array<i64: 2, 32>}, {pipeline_mode = #tpu.pipeline_mode<synchronous>, transform_indices = @transform_6, window_bounds = array<i64: 32, 32>}, {pipeline_mode = #tpu.pipeline_mode<synchronous>, transform_indices = @transform_7, window_bounds = array<i64: 1, 32>}, {transform_indices = @transform_8, window_bounds = array<i64: 1, 8, 32>}]} {
    %c0 = arith.constant 0 : index
    %c0_0 = arith.constant 0 : index
    %c0_1 = arith.constant 0 : index
    %0 = vector.load %arg1[%c0, %c0_0, %c0_1] : memref<1x8x32xf32, #tpu.memory_space<vmem>>, vector<1x8x32xf32>
    %1 = vector.shape_cast %0 : vector<1x8x32xf32> to vector<8x32xf32>
    %c0_2 = arith.constant 0 : index
    %c0_3 = arith.constant 0 : index
    %c0_4 = arith.constant 0 : index
    %2 = vector.load %arg2[%c0_2, %c0_3, %c0_4] : memref<1x8x32xf32, #tpu.memory_space<vmem>>, vector<1x8x32xf32>
    %3 = vector.shape_cast %2 : vector<1x8x32xf32> to vector<8x32xf32>
    %c0_5 = arith.constant 0 : index
    %c0_6 = arith.constant 0 : index
    %4 = vector.load %arg3[%c0_5, %c0_6] : memref<32x32xf32, #tpu.memory_space<vmem>>, vector<32x32xf32>
    %cst = arith.constant dense<0.000000e+00> : vector<8x32xf32>
    %5 = tpu.matmul %1, %4, %cst {dimension_numbers = #tpu.dot_dimension_numbers<[1], [0], [0], [1], [0, 0, 1, 1], [], []>} : vector<8x32xf32>, vector<32x32xf32>, vector<8x32xf32> -> vector<8x32xf32>
    %c0_7 = arith.constant 0 : index
    %c0_8 = arith.constant 0 : index
    %6 = vector.load %arg4[%c0_7, %c0_8] : memref<32x64xf32, #tpu.memory_space<vmem>>, vector<32x64xf32>
    %cst_9 = arith.constant dense<0.000000e+00> : vector<8x64xf32>
    %7 = tpu.matmul %3, %6, %cst_9 {dimension_numbers = #tpu.dot_dimension_numbers<[1], [0], [0], [1], [0, 0, 1, 1], [], []>} : vector<8x32xf32>, vector<32x64xf32>, vector<8x64xf32> -> vector<8x64xf32>
    %cst_10 = arith.constant dense<0xFF800000> : vector<32xf32>
    %8 = vector.multi_reduction <maximumf>, %5, %cst_10 [0] : vector<8x32xf32> to vector<32xf32>
    %9 = vector.shape_cast %8 : vector<32xf32> to vector<1x32xf32>
    %cst_11 = arith.constant dense<0.000000e+00> : vector<32xf32>
    %10 = vector.multi_reduction <add>, %5, %cst_11 [0] : vector<8x32xf32> to vector<32xf32>
    %11 = vector.shape_cast %10 : vector<32xf32> to vector<1x32xf32>
    %cst_12 = arith.constant 1.250000e-01 : f32
    %12 = vector.broadcast %cst_12 : f32 to vector<1x32xf32>
    %13 = arith.mulf %11, %12 : vector<1x32xf32>
    %14 = arith.addf %9, %13 : vector<1x32xf32>
    %cst_13 = arith.constant dense<0xFF800000> : vector<64xf32>
    %15 = vector.multi_reduction <maximumf>, %7, %cst_13 [0] : vector<8x64xf32> to vector<64xf32>
    %16 = vector.shape_cast %15 : vector<64xf32> to vector<1x64xf32>
    %cst_14 = arith.constant dense<0.000000e+00> : vector<64xf32>
    %17 = vector.multi_reduction <add>, %7, %cst_14 [0] : vector<8x64xf32> to vector<64xf32>
    %18 = vector.shape_cast %17 : vector<64xf32> to vector<1x64xf32>
    %cst_15 = arith.constant 1.250000e-01 : f32
    %19 = vector.broadcast %cst_15 : f32 to vector<1x64xf32>
    %20 = arith.mulf %18, %19 : vector<1x64xf32>
    %21 = arith.addf %16, %20 : vector<1x64xf32>
    %22 = vector.extract_strided_slice %21 {offsets = [0, 0], sizes = [1, 32], strides = [1, 1]} : vector<1x64xf32> to vector<1x32xf32>
    %23 = vector.extract_strided_slice %21 {offsets = [0, 32], sizes = [1, 32], strides = [1, 1]} : vector<1x64xf32> to vector<1x32xf32>
    %24 = tpu.concatenate %14, %22, %23 in 0 : vector<1x32xf32>, vector<1x32xf32>, vector<1x32xf32> -> vector<3x32xf32>
    %c0_16 = arith.constant 0 : index
    %c0_17 = arith.constant 0 : index
    %25 = vector.load %arg5[%c0_16, %c0_17] : memref<32x2xf32, #tpu.memory_space<vmem>>, vector<32x2xf32>
    %cst_18 = arith.constant dense<0.000000e+00> : vector<3x2xf32>
    %26 = tpu.matmul %24, %25, %cst_18 {dimension_numbers = #tpu.dot_dimension_numbers<[1], [0], [0], [1], [0, 0, 1, 1], [], []>} : vector<3x32xf32>, vector<32x2xf32>, vector<3x2xf32> -> vector<3x2xf32>
    %cst_19 = arith.constant 0.000000e+00 : f32
    %27 = vector.broadcast %cst_19 : f32 to vector<3x2xf32>
    %28 = arith.maximumf %26, %27 : vector<3x2xf32>
    %c0_20 = arith.constant 0 : index
    %c0_21 = arith.constant 0 : index
    %29 = vector.load %arg6[%c0_20, %c0_21] : memref<2x32xf32, #tpu.memory_space<vmem>>, vector<2x32xf32>
    %cst_22 = arith.constant dense<0.000000e+00> : vector<3x32xf32>
    %30 = tpu.matmul %28, %29, %cst_22 {dimension_numbers = #tpu.dot_dimension_numbers<[1], [0], [0], [1], [0, 0, 1, 1], [], []>} : vector<3x2xf32>, vector<2x32xf32>, vector<3x32xf32> -> vector<3x32xf32>
    %31 = arith.negf %30 : vector<3x32xf32>
    %32 = math.exp %31 : vector<3x32xf32>
    %cst_23 = arith.constant 1.000000e+00 : f32
    %33 = vector.broadcast %cst_23 : f32 to vector<3x32xf32>
    %34 = arith.addf %33, %32 : vector<3x32xf32>
    %35 = arith.divf %33, %34 : vector<3x32xf32>
    %36 = vector.extract_strided_slice %35 {offsets = [0, 0], sizes = [1, 32], strides = [1, 1]} : vector<3x32xf32> to vector<1x32xf32>
    %37 = vector.broadcast %36 : vector<1x32xf32> to vector<8x32xf32>
    %38 = arith.mulf %5, %37 : vector<8x32xf32>
    %39 = vector.extract_strided_slice %7 {offsets = [0, 0], sizes = [8, 32], strides = [1, 1]} : vector<8x64xf32> to vector<8x32xf32>
    %40 = vector.extract_strided_slice %35 {offsets = [1, 0], sizes = [1, 32], strides = [1, 1]} : vector<3x32xf32> to vector<1x32xf32>
    %41 = vector.broadcast %40 : vector<1x32xf32> to vector<8x32xf32>
    %42 = arith.mulf %39, %41 : vector<8x32xf32>
    %43 = vector.extract_strided_slice %7 {offsets = [0, 32], sizes = [8, 32], strides = [1, 1]} : vector<8x64xf32> to vector<8x32xf32>
    %44 = vector.extract_strided_slice %35 {offsets = [2, 0], sizes = [1, 32], strides = [1, 1]} : vector<3x32xf32> to vector<1x32xf32>
    %45 = vector.broadcast %44 : vector<1x32xf32> to vector<8x32xf32>
    %46 = arith.mulf %43, %45 : vector<8x32xf32>
    %c0_24 = arith.constant 0 : index
    %c0_25 = arith.constant 0 : index
    %47 = vector.load %arg7[%c0_24, %c0_25] : memref<32x32xf32, #tpu.memory_space<vmem>>, vector<32x32xf32>
    %c0_26 = arith.constant 0 : index
    %c0_27 = arith.constant 0 : index
    %48 = vector.load %arg8[%c0_26, %c0_27] : memref<1x32xf32, #tpu.memory_space<vmem>>, vector<1x32xf32>
    %49 = vector.shape_cast %48 : vector<1x32xf32> to vector<1x32xf32>
    %50 = vector.broadcast %49 : vector<1x32xf32> to vector<8x32xf32>
    %51 = vector.extract_strided_slice %38 {offsets = [0, 0], sizes = [8, 8], strides = [1, 1]} : vector<8x32xf32> to vector<8x8xf32>
    %52 = vector.extract_strided_slice %42 {offsets = [0, 0], sizes = [8, 8], strides = [1, 1]} : vector<8x32xf32> to vector<8x8xf32>
    %53 = vector.extract_strided_slice %46 {offsets = [0, 0], sizes = [8, 8], strides = [1, 1]} : vector<8x32xf32> to vector<8x8xf32>
    %54 = tpu.transpose %52, [1, 0] : vector<8x8xf32> -> vector<8x8xf32>
    %cst_28 = arith.constant dense<0.000000e+00> : vector<8x8xf32>
    %55 = tpu.matmul %51, %54, %cst_28 {dimension_numbers = #tpu.dot_dimension_numbers<[1], [0], [0], [1], [0, 0, 1, 1], [], []>} : vector<8x8xf32>, vector<8x8xf32>, vector<8x8xf32> -> vector<8x8xf32>
    %cst_29 = arith.constant 0.176776692 : f32
    %56 = vector.broadcast %cst_29 : f32 to vector<8x8xf32>
    %57 = arith.mulf %55, %56 : vector<8x8xf32>
    %cst_30 = arith.constant dense<0xFF800000> : vector<8xf32>
    %58 = vector.multi_reduction <maximumf>, %57, %cst_30 [1] : vector<8x8xf32> to vector<8xf32>
    %59 = vector.shape_cast %58 : vector<8xf32> to vector<8x1xf32>
    %60 = vector.broadcast %59 : vector<8x1xf32> to vector<8x8xf32>
    %61 = arith.subf %57, %60 : vector<8x8xf32>
    %62 = math.exp %61 : vector<8x8xf32>
    %cst_31 = arith.constant dense<0.000000e+00> : vector<8xf32>
    %63 = vector.multi_reduction <add>, %62, %cst_31 [1] : vector<8x8xf32> to vector<8xf32>
    %64 = vector.shape_cast %63 : vector<8xf32> to vector<8x1xf32>
    %65 = tpu.reciprocal %64 {approx = true} : vector<8x1xf32> -> vector<8x1xf32>
    %66 = vector.broadcast %65 : vector<8x1xf32> to vector<8x8xf32>
    %67 = arith.mulf %62, %66 : vector<8x8xf32>
    %cst_32 = arith.constant dense<0.000000e+00> : vector<8x8xf32>
    %68 = tpu.matmul %67, %53, %cst_32 {dimension_numbers = #tpu.dot_dimension_numbers<[1], [0], [0], [1], [0, 0, 1, 1], [], []>} : vector<8x8xf32>, vector<8x8xf32>, vector<8x8xf32> -> vector<8x8xf32>
    %69 = vector.extract_strided_slice %47 {offsets = [0, 0], sizes = [8, 32], strides = [1, 1]} : vector<32x32xf32> to vector<8x32xf32>
    %cst_33 = arith.constant dense<0.000000e+00> : vector<8x32xf32>
    %70 = tpu.matmul %68, %69, %cst_33 {dimension_numbers = #tpu.dot_dimension_numbers<[1], [0], [0], [1], [0, 0, 1, 1], [], []>} : vector<8x8xf32>, vector<8x32xf32>, vector<8x32xf32> -> vector<8x32xf32>
    %71 = arith.addf %50, %70 : vector<8x32xf32>
    %72 = vector.extract_strided_slice %38 {offsets = [0, 8], sizes = [8, 8], strides = [1, 1]} : vector<8x32xf32> to vector<8x8xf32>
    %73 = vector.extract_strided_slice %42 {offsets = [0, 8], sizes = [8, 8], strides = [1, 1]} : vector<8x32xf32> to vector<8x8xf32>
    %74 = vector.extract_strided_slice %46 {offsets = [0, 8], sizes = [8, 8], strides = [1, 1]} : vector<8x32xf32> to vector<8x8xf32>
    %75 = tpu.transpose %73, [1, 0] : vector<8x8xf32> -> vector<8x8xf32>
    %cst_34 = arith.constant dense<0.000000e+00> : vector<8x8xf32>
    %76 = tpu.matmul %72, %75, %cst_34 {dimension_numbers = #tpu.dot_dimension_numbers<[1], [0], [0], [1], [0, 0, 1, 1], [], []>} : vector<8x8xf32>, vector<8x8xf32>, vector<8x8xf32> -> vector<8x8xf32>
    %cst_35 = arith.constant 0.176776692 : f32
    %77 = vector.broadcast %cst_35 : f32 to vector<8x8xf32>
    %78 = arith.mulf %76, %77 : vector<8x8xf32>
    %cst_36 = arith.constant dense<0xFF800000> : vector<8xf32>
    %79 = vector.multi_reduction <maximumf>, %78, %cst_36 [1] : vector<8x8xf32> to vector<8xf32>
    %80 = vector.shape_cast %79 : vector<8xf32> to vector<8x1xf32>
    %81 = vector.broadcast %80 : vector<8x1xf32> to vector<8x8xf32>
    %82 = arith.subf %78, %81 : vector<8x8xf32>
    %83 = math.exp %82 : vector<8x8xf32>
    %cst_37 = arith.constant dense<0.000000e+00> : vector<8xf32>
    %84 = vector.multi_reduction <add>, %83, %cst_37 [1] : vector<8x8xf32> to vector<8xf32>
    %85 = vector.shape_cast %84 : vector<8xf32> to vector<8x1xf32>
    %86 = tpu.reciprocal %85 {approx = true} : vector<8x1xf32> -> vector<8x1xf32>
    %87 = vector.broadcast %86 : vector<8x1xf32> to vector<8x8xf32>
    %88 = arith.mulf %83, %87 : vector<8x8xf32>
    %cst_38 = arith.constant dense<0.000000e+00> : vector<8x8xf32>
    %89 = tpu.matmul %88, %74, %cst_38 {dimension_numbers = #tpu.dot_dimension_numbers<[1], [0], [0], [1], [0, 0, 1, 1], [], []>} : vector<8x8xf32>, vector<8x8xf32>, vector<8x8xf32> -> vector<8x8xf32>
    %90 = vector.extract_strided_slice %47 {offsets = [8, 0], sizes = [8, 32], strides = [1, 1]} : vector<32x32xf32> to vector<8x32xf32>
    %cst_39 = arith.constant dense<0.000000e+00> : vector<8x32xf32>
    %91 = tpu.matmul %89, %90, %cst_39 {dimension_numbers = #tpu.dot_dimension_numbers<[1], [0], [0], [1], [0, 0, 1, 1], [], []>} : vector<8x8xf32>, vector<8x32xf32>, vector<8x32xf32> -> vector<8x32xf32>
    %92 = arith.addf %71, %91 : vector<8x32xf32>
    %93 = vector.extract_strided_slice %38 {offsets = [0, 16], sizes = [8, 8], strides = [1, 1]} : vector<8x32xf32> to vector<8x8xf32>
    %94 = vector.extract_strided_slice %42 {offsets = [0, 16], sizes = [8, 8], strides = [1, 1]} : vector<8x32xf32> to vector<8x8xf32>
    %95 = vector.extract_strided_slice %46 {offsets = [0, 16], sizes = [8, 8], strides = [1, 1]} : vector<8x32xf32> to vector<8x8xf32>
    %96 = tpu.transpose %94, [1, 0] : vector<8x8xf32> -> vector<8x8xf32>
    %cst_40 = arith.constant dense<0.000000e+00> : vector<8x8xf32>
    %97 = tpu.matmul %93, %96, %cst_40 {dimension_numbers = #tpu.dot_dimension_numbers<[1], [0], [0], [1], [0, 0, 1, 1], [], []>} : vector<8x8xf32>, vector<8x8xf32>, vector<8x8xf32> -> vector<8x8xf32>
    %cst_41 = arith.constant 0.176776692 : f32
    %98 = vector.broadcast %cst_41 : f32 to vector<8x8xf32>
    %99 = arith.mulf %97, %98 : vector<8x8xf32>
    %cst_42 = arith.constant dense<0xFF800000> : vector<8xf32>
    %100 = vector.multi_reduction <maximumf>, %99, %cst_42 [1] : vector<8x8xf32> to vector<8xf32>
    %101 = vector.shape_cast %100 : vector<8xf32> to vector<8x1xf32>
    %102 = vector.broadcast %101 : vector<8x1xf32> to vector<8x8xf32>
    %103 = arith.subf %99, %102 : vector<8x8xf32>
    %104 = math.exp %103 : vector<8x8xf32>
    %cst_43 = arith.constant dense<0.000000e+00> : vector<8xf32>
    %105 = vector.multi_reduction <add>, %104, %cst_43 [1] : vector<8x8xf32> to vector<8xf32>
    %106 = vector.shape_cast %105 : vector<8xf32> to vector<8x1xf32>
    %107 = tpu.reciprocal %106 {approx = true} : vector<8x1xf32> -> vector<8x1xf32>
    %108 = vector.broadcast %107 : vector<8x1xf32> to vector<8x8xf32>
    %109 = arith.mulf %104, %108 : vector<8x8xf32>
    %cst_44 = arith.constant dense<0.000000e+00> : vector<8x8xf32>
    %110 = tpu.matmul %109, %95, %cst_44 {dimension_numbers = #tpu.dot_dimension_numbers<[1], [0], [0], [1], [0, 0, 1, 1], [], []>} : vector<8x8xf32>, vector<8x8xf32>, vector<8x8xf32> -> vector<8x8xf32>
    %111 = vector.extract_strided_slice %47 {offsets = [16, 0], sizes = [8, 32], strides = [1, 1]} : vector<32x32xf32> to vector<8x32xf32>
    %cst_45 = arith.constant dense<0.000000e+00> : vector<8x32xf32>
    %112 = tpu.matmul %110, %111, %cst_45 {dimension_numbers = #tpu.dot_dimension_numbers<[1], [0], [0], [1], [0, 0, 1, 1], [], []>} : vector<8x8xf32>, vector<8x32xf32>, vector<8x32xf32> -> vector<8x32xf32>
    %113 = arith.addf %92, %112 : vector<8x32xf32>
    %114 = vector.extract_strided_slice %38 {offsets = [0, 24], sizes = [8, 8], strides = [1, 1]} : vector<8x32xf32> to vector<8x8xf32>
    %115 = vector.extract_strided_slice %42 {offsets = [0, 24], sizes = [8, 8], strides = [1, 1]} : vector<8x32xf32> to vector<8x8xf32>
    %116 = vector.extract_strided_slice %46 {offsets = [0, 24], sizes = [8, 8], strides = [1, 1]} : vector<8x32xf32> to vector<8x8xf32>
    %117 = tpu.transpose %115, [1, 0] : vector<8x8xf32> -> vector<8x8xf32>
    %cst_46 = arith.constant dense<0.000000e+00> : vector<8x8xf32>
    %118 = tpu.matmul %114, %117, %cst_46 {dimension_numbers = #tpu.dot_dimension_numbers<[1], [0], [0], [1], [0, 0, 1, 1], [], []>} : vector<8x8xf32>, vector<8x8xf32>, vector<8x8xf32> -> vector<8x8xf32>
    %cst_47 = arith.constant 0.176776692 : f32
    %119 = vector.broadcast %cst_47 : f32 to vector<8x8xf32>
    %120 = arith.mulf %118, %119 : vector<8x8xf32>
    %cst_48 = arith.constant dense<0xFF800000> : vector<8xf32>
    %121 = vector.multi_reduction <maximumf>, %120, %cst_48 [1] : vector<8x8xf32> to vector<8xf32>
    %122 = vector.shape_cast %121 : vector<8xf32> to vector<8x1xf32>
    %123 = vector.broadcast %122 : vector<8x1xf32> to vector<8x8xf32>
    %124 = arith.subf %120, %123 : vector<8x8xf32>
    %125 = math.exp %124 : vector<8x8xf32>
    %cst_49 = arith.constant dense<0.000000e+00> : vector<8xf32>
    %126 = vector.multi_reduction <add>, %125, %cst_49 [1] : vector<8x8xf32> to vector<8xf32>
    %127 = vector.shape_cast %126 : vector<8xf32> to vector<8x1xf32>
    %128 = tpu.reciprocal %127 {approx = true} : vector<8x1xf32> -> vector<8x1xf32>
    %129 = vector.broadcast %128 : vector<8x1xf32> to vector<8x8xf32>
    %130 = arith.mulf %125, %129 : vector<8x8xf32>
    %cst_50 = arith.constant dense<0.000000e+00> : vector<8x8xf32>
    %131 = tpu.matmul %130, %116, %cst_50 {dimension_numbers = #tpu.dot_dimension_numbers<[1], [0], [0], [1], [0, 0, 1, 1], [], []>} : vector<8x8xf32>, vector<8x8xf32>, vector<8x8xf32> -> vector<8x8xf32>
    %132 = vector.extract_strided_slice %47 {offsets = [24, 0], sizes = [8, 32], strides = [1, 1]} : vector<32x32xf32> to vector<8x32xf32>
    %cst_51 = arith.constant dense<0.000000e+00> : vector<8x32xf32>
    %133 = tpu.matmul %131, %132, %cst_51 {dimension_numbers = #tpu.dot_dimension_numbers<[1], [0], [0], [1], [0, 0, 1, 1], [], []>} : vector<8x8xf32>, vector<8x32xf32>, vector<8x32xf32> -> vector<8x32xf32>
    %134 = arith.addf %113, %133 : vector<8x32xf32>
    %c0_52 = arith.constant 0 : index
    %c0_53 = arith.constant 0 : index
    %c0_54 = arith.constant 0 : index
    %135 = vector.load %arg9[%c0_52, %c0_53, %c0_54] : memref<1x8x32xf32, #tpu.memory_space<vmem>>, vector<1x8x32xf32>
    %136 = vector.shape_cast %135 : vector<1x8x32xf32> to vector<8x32xf32>
    %137 = vector.shape_cast %134 : vector<8x32xf32> to vector<1x8x32xf32>
    tpu.vector_store %arg9[%c0_52, %c0_53, %c0_54], %137 {strides = array<i32>} : memref<1x8x32xf32, #tpu.memory_space<vmem>>, vector<1x8x32xf32>,
    return
  }
  func.func @transform_0(%arg0: i32) -> (i32, i32, i32) {
    %c0_i32 = arith.constant 0 : i32
    %c0_i32_0 = arith.constant 0 : i32
    %c0_i32_1 = arith.constant 0 : i32
    return %arg0, %c0_i32, %c0_i32_0 : i32, i32, i32
  }
  func.func @transform_1(%arg0: i32) -> (i32, i32, i32) {
    %c0_i32 = arith.constant 0 : i32
    %c0_i32_0 = arith.constant 0 : i32
    %c0_i32_1 = arith.constant 0 : i32
    return %arg0, %c0_i32, %c0_i32_0 : i32, i32, i32
  }
  func.func @transform_2(%arg0: i32) -> (i32, i32) {
    %c0_i32 = arith.constant 0 : i32
    %c0_i32_0 = arith.constant 0 : i32
    %c0_i32_1 = arith.constant 0 : i32
    return %c0_i32, %c0_i32_0 : i32, i32
  }
  func.func @transform_3(%arg0: i32) -> (i32, i32) {
    %c0_i32 = arith.constant 0 : i32
    %c0_i32_0 = arith.constant 0 : i32
    %c0_i32_1 = arith.constant 0 : i32
    return %c0_i32, %c0_i32_0 : i32, i32
  }
  func.func @transform_4(%arg0: i32) -> (i32, i32) {
    %c0_i32 = arith.constant 0 : i32
    %c0_i32_0 = arith.constant 0 : i32
    %c0_i32_1 = arith.constant 0 : i32
    return %c0_i32, %c0_i32_0 : i32, i32
  }
  func.func @transform_5(%arg0: i32) -> (i32, i32) {
    %c0_i32 = arith.constant 0 : i32
    %c0_i32_0 = arith.constant 0 : i32
    %c0_i32_1 = arith.constant 0 : i32
    return %c0_i32, %c0_i32_0 : i32, i32
  }
  func.func @transform_6(%arg0: i32) -> (i32, i32) {
    %c0_i32 = arith.constant 0 : i32
    %c0_i32_0 = arith.constant 0 : i32
    %c0_i32_1 = arith.constant 0 : i32
    return %c0_i32, %c0_i32_0 : i32, i32
  }
  func.func @transform_7(%arg0: i32) -> (i32, i32) {
    %c0_i32 = arith.constant 0 : i32
    %c0_i32_0 = arith.constant 0 : i32
    %c0_i32_1 = arith.constant 0 : i32
    return %c0_i32, %c0_i32_0 : i32, i32
  }
  func.func @transform_8(%arg0: i32) -> (i32, i32, i32) {
    %c0_i32 = arith.constant 0 : i32
    %c0_i32_0 = arith.constant 0 : i32
    %c0_i32_1 = arith.constant 0 : i32
    return %arg0, %c0_i32, %c0_i32_0 : i32, i32, i32
  }
}

</mosaic_0001>

<bundles_post_ra>
// kernel: tpu_custom_call.1
= control target key start
LH: loop header
LB: loop body
LE: loop exit
PB: predicated region body
PF: predicated region fallthrough
CT: control target
= control target key end

     0   :  { %s2776_s0 = inlined_call_operand.hbm [shape: f32[2,8,32], index: 0, kind: input, shape index: {}]   ;;  %s2777_s1 = inlined_call_operand.hbm [shape: f32[2,8,32], index: 1, kind: input, shape index: {}]   ;;  %s2778_s2 = inlined_call_operand.vmem [shape: f32[32,32], index: 2, kind: input, shape index: {}]   ;;  %s2779_s3 = inlined_call_operand.hbm [shape: f32[32,64], index: 3, kind: input, shape index: {}]   ;;  %s2780_s4 = inlined_call_operand.vmem [shape: f32[32,2], index: 4, kind: input, shape index: {}]   ;;  %s2781_s5 = inlined_call_operand.vmem [shape: f32[2,32], index: 5, kind: input, shape index: {}]   ;;  %s2782_s6 = inlined_call_operand.hbm [shape: f32[32,32], index: 6, kind: input, shape index: {}]   ;;  %s2783_s7 = inlined_call_operand.vmem [shape: f32[1,32], index: 7, kind: input, shape index: {}]   ;;  %s2784_s8 = inlined_call_operand.hbm [shape: f32[2,8,32], index: 8, kind: output, shape index: {}]  }
   0x1   :  { %2792 = sst [smem:[#allocation19_spill]] %s2779_s3 }
   0x2   :  { %2793 = sst [smem:[#allocation20_spill]] %s2782_s6 }
   0x3   :  { %13 = vsyncpa [#allocation3], 0 }
   0x4   :  { %15 = vsyncpa [#allocation3 + $0x1], 0 }
   0x5   :  { %16 = vsyncpa [#allocation6], 0 }
   0x6   :  { %18 = vsyncpa [#allocation6 + $0x1], 0 }
   0x7   :  { %19 = vsyncpa [#allocation9], 0 }
   0x8   :  { %20 = vsyncpa [#allocation4], 0 }
   0x9   :  { %22 = vsyncpa [#allocation4 + $0x1], 0  ;;  %s2397_s27 = smov 0   ;;  %s2399_s28 = smov 0  }
   0xa   :  { %s2401_s29 = smov 0   ;;  %s2403_s30 = smov 0  }
   0xb LB: > { %2794 = sst [smem:[#allocation16_spill]] %s2329_s29  ;;  %s2418_s9 = sadd.s32 4294967295, %s2333_s30   ;;  %s2333_s30 = sphi %s2403_s30, %s2815_s30   ;;  %s2329_s29 = sphi %s2401_s29, %s2817_s29   ;;  %s2325_s28 = sphi %s2399_s28, %s2819_s28   ;;  %s2321_s27 = sphi %s2397_s27, %s2818_s27  }
   0xc   : > { %s1864_s10 = sadd.s32 4294967294, %s2333_s30   ;;  %p48_p0 = scmp.ne.s32.totalorder %s2325_s28, %s2321_s27 }
   0xd   : > { %p2785_p1 = scmp.eq.s32.totalorder %s2418_s9, 0  ;;  %p230_p3 = scmp.eq.s32.totalorder %s1864_s10, 1 }
   0xe   : > { %p1865_p5 = scmp.ge.s32.totalorder %s2333_s30, 1  ;;  %p237_p7 = scmp.lt.s32.totalorder %s2333_s30, 3 }
   0xf   : > { %p2427_p4 = por %p2785_p1, %p48_p0  ;;  %p2432_p6 = por %p230_p3, %p48_p0 }
  0x10   : > { %p2437_p8 = pnand %p1865_p5, %p237_p7  ;;  %s2335_s14 = smov [#allocation7]  }
  0x11   : > { %s2795_s11 = scalar_select %p2427_p4, 1, 0 }
  0x12   : > { %s2796_s12 = scalar_select %p2432_p6, 1, 0 }
  0x13   : > { %s2797_s13 = scalar_select %p2437_p8, 1, 0 }
  0x14   : > { %s252_s15 = sshll.u32 %s2335_s14, 4  ;;  %p2059_p9 = pneg %p2437_p8  ;;  %s253_s15 = int_to_ptr.vmem [resolvable:$true] %s252_s15 }
  0x15   : > { %s2336_s17 = smov [#allocation8]   ;;  %s2160_s19 = scalar_lea.vmem %s253_s15, 512 }
  0x16   : > { %p2446_p11 = pnand %p2059_p9, %p2785_p1  ;;  %s271_s18 = sshll.u32 %s2336_s17, 4  ;;  %s272_s18 = int_to_ptr.vmem [resolvable:$true] %s271_s18 }
  0x17   : > { %p2161_p13 = scmp.ne.s32.totalorder %s253_s15, %s2160_s19  ;;  %p2168_p5 = scmp.lt.s32.totalorder %s253_s15, %s253_s15 }
  0x18   : > { %p2151_p12 = pneg %p2446_p11  ;;  %p2169_p7 = scmp.lt.s32.totalorder %s2160_s19, %s2160_s19 }
  0x1a   : > { %p2163_p0 = pnand %p2161_p13, %p2151_p12  ;;  %p2170_p10 = por %p2169_p7, %p2168_p5 }
  0x1c   : > { %p2164_p3 = pneg %p2163_p0 }
  0x1e   : > { %p2171_p9 = pnand %p2170_p10, %p2164_p3 }
  0x20   : > { %2174 = shalt.err (!%p2171_p9)
}
  0x21   : > { %s2337_s20 = smov 128   ;;  %s2338_s21 = smov 8  }
  0x22   : > { %s2799_s3 = sld [smem:[#allocation19_spill]]  ;;  %s2186_s24 = scalar_lea.vmem %s272_s18, 512 }
  0x23   : > { %p2187_p1 = scmp.ne.s32.totalorder %s272_s18, %s2186_s24  ;;  %p2194_p2 = scmp.lt.s32.totalorder %s272_s18, %s272_s18 }
  0x24   : > { %p2195_p6 = scmp.lt.s32.totalorder %s2186_s24, %s2186_s24 }
  0x25   : > { %p2189_p13 = pnand %p2187_p1, %p2151_p12 }
  0x26   : > { %p2196_p5 = por %p2195_p6, %p2194_p2 }
  0x27   : > { %p2190_p0 = pneg %p2189_p13 }
  0x28   : > { %2062 = dma.hbm_to_vmem [thread:$0]  (!%p2446_p11), %s2799_s3, 512, %s253_s15, [#allocation6], %s2337_s20, %s2337_s20, %s2338_s21  }
  0x29   : > { %p2197_p10 = pnand %p2196_p5, %p2190_p0 }
  0x2b   : > { %2200 = shalt.err (!%p2197_p10)
}
  0x2c   : > { %s2800_s6 = sld [smem:[#allocation20_spill]]  ;;  %s2469_s10 = sadd.s32 1, %s2333_s30  }
  0x2d   : > { %2801 = sst [smem:[#allocation17_spill]] %s2469_s10  ;;  %s35_s14 = sadd.s32 1, %s2329_s29 }
  0x2e   : > { %s32_s15 = ssub.s32 %s2333_s30, %s2469_s10  ;;  %p42_p1 = scmp.ne.s32.totalorder %s2329_s29, %s2325_s28 }
  0x2f   : > { %p33_p2 = scmp.eq.s32.totalorder %s32_s15, 0  ;;  %p43_p6 = scmp.eq.s32.totalorder %s2333_s30, 0 }
  0x30   : > { %p2802_p12 = scmp.eq.s32.totalorder %s2418_s9, 1  ;;  %p2079_p7 = scmp.lt.s32.totalorder %s2333_s30, 2 }
  0x31   : > { %s2485_s17 = scalar_select %p33_p2, %s2329_s29, %s35_s14  }
  0x32   : > { %2065 = dma.hbm_to_vmem [thread:$0]  (!%p2446_p11), %s2800_s6, 512, %s272_s18, [#allocation9], %s2337_s20, %s2337_s20, %s2338_s21  }
  0x33   : > { %p2479_p3 = por %p2802_p12, %p42_p1  ;;  %2804 = sst [smem:[#allocation18_spill]] %s2485_s17 }
  0x34   : > { %p44_p9 = por %p43_p6, %p42_p1  ;;  %s288_s19 = sand.u32 1, %s2329_s29  }
  0x35   : > { %s2803_s16 = scalar_select %p2479_p3, 1, 0 }
  0x36   : > { %s2488_s18 = sshll.u32 %s288_s19, 3  ;;  %s1870_s20 = sshll.u32 %s2333_s30, 7 }
  0x37   : > { %s2494_s23 = scalar_lea.hbm %s2776_s0, %s1870_s20  ;;  %s292_s24 = scalar_lea.vmem [#allocation2], %s2488_s18 }
  0x38   : > { %s299_s25 = sshll.u32 %s292_s24, 4  ;;  %p2499_p11 = pnand %p2079_p7, %p44_p9  ;;  %s2497_s25 = int_to_ptr.vmem [resolvable:$true] %s299_s25 }
  0x39   : > { %s2506_s3 = scalar_lea.hbm %s2777_s1, %s1870_s20  ;;  %s306_s21 = sand.u32 1, %s2333_s30  }
  0x3a   : > { %s289_s22 = scalar_lea.sflag [#allocation3], %s288_s19  ;;  %s2201_s6 = scalar_lea.hbm %s2494_s23, 128 }
  0x3b   : > { %p2202_p13 = scmp.ne.s32.totalorder %s2494_s23, %s2201_s6  ;;  %p2203_p0 = pneg %p2499_p11 }
  0x3c   : > { %s2206_s29 = scalar_lea.hbm %s2776_s0, 256  ;;  %p2207_p1 = scmp.lt.s32.totalorder %s2494_s23, %s2776_s0 }
  0x3d   : > { %p2204_p5 = pnand %p2203_p0, %p2202_p13  ;;  %p2208_p2 = scmp.lt.s32.totalorder %s2206_s29, %s2201_s6 }
  0x3f   : > { %p2205_p10 = pneg %p2204_p5  ;;  %p2209_p6 = por %p2208_p2, %p2207_p1 }
  0x41   : > { %p2210_p12 = pnand %p2209_p6, %p2205_p10 }
  0x43   : > { %2213 = shalt.err (!%p2210_p12)
}
  0x44   : > { %s2214_s19 = scalar_lea.vmem %s2497_s25, 128  ;;  %s2339_s17 = smov [#allocation2]  }
  0x45   : > { %p2215_p7 = scmp.ne.s32.totalorder %s2497_s25, %s2214_s19  ;;  %s2219_s20 = sshll.u32 %s2339_s17, 4  ;;  %s2220_s20 = int_to_ptr.vmem [resolvable:$false] %s2219_s20 }
  0x46   : > { %s2221_s15 = scalar_lea.vmem %s2220_s20, 256  ;;  %p2222_p5 = scmp.lt.s32.totalorder %s2497_s25, %s2220_s20 }
  0x47   : > { %p2217_p9 = pnand %p2215_p7, %p2203_p0  ;;  %p2223_p3 = scmp.lt.s32.totalorder %s2221_s15, %s2214_s19 }
  0x49   : > { %p2218_p13 = pneg %p2217_p9  ;;  %p2224_p4 = por %p2223_p3, %p2222_p5 }
  0x4b   : > { %p2225_p1 = pnand %p2224_p4, %p2218_p13 }
  0x4d   : > { %2228 = shalt.err (!%p2225_p1)
}
  0x4e   : > { %2069 = dma.hbm_to_vmem [thread:$0]  (!%p2499_p11), %s2494_s23, 128, %s2497_s25, %s289_s22  }
  0x4f   : > { %s310_s6 = scalar_lea.vmem [#allocation5], %s2488_s18  ;;  %s307_s10 = scalar_lea.sflag [#allocation6], %s306_s21 }
  0x50   : > { %s317_s29 = sshll.u32 %s310_s6, 4  ;;  %s2229_s24 = scalar_lea.hbm %s2506_s3, 128  ;;  %s318_s29 = int_to_ptr.vmem [resolvable:$true] %s317_s29 }
  0x51   : > { %p2230_p3 = scmp.ne.s32.totalorder %s2506_s3, %s2229_s24  ;;  %s2234_s17 = scalar_lea.hbm %s2777_s1, 256 }
  0x52   : > { %p2235_p2 = scmp.lt.s32.totalorder %s2506_s3, %s2777_s1  ;;  %p2236_p6 = scmp.lt.s32.totalorder %s2234_s17, %s2229_s24 }
  0x53   : > { %p2232_p4 = pnand %p2230_p3, %p2203_p0 }
  0x54   : > { %p2237_p12 = por %p2236_p6, %p2235_p2 }
  0x55   : > { %p2233_p10 = pneg %p2232_p4 }
  0x57   : > { %p2238_p7 = pnand %p2237_p12, %p2233_p10 }
  0x59   : > { %2241 = shalt.err (!%p2238_p7)
}
  0x5a   : > { %s2242_s18 = scalar_lea.vmem %s318_s29, 128  ;;  %s2340_s23 = smov [#allocation5]  }
  0x5b   : > { %p2243_p9 = scmp.ne.s32.totalorder %s318_s29, %s2242_s18  ;;  %s2247_s25 = sshll.u32 %s2340_s23, 4  ;;  %s2248_s25 = int_to_ptr.vmem [resolvable:$false] %s2247_s25 }
  0x5c   : > { %s2249_s21 = scalar_lea.vmem %s2248_s25, 256  ;;  %p2250_p1 = scmp.lt.s32.totalorder %s318_s29, %s2248_s25 }
  0x5d   : > { %p2245_p13 = pnand %p2243_p9, %p2203_p0  ;;  %p2251_p3 = scmp.lt.s32.totalorder %s2249_s21, %s2242_s18 }
  0x5f   : > { %p2246_p5 = pneg %p2245_p13  ;;  %p2252_p4 = por %p2251_p3, %p2250_p1 }
  0x61   : > { %p2253_p8 = pnand %p2252_p4, %p2246_p5 }
  0x63   : > { %2256 = shalt.err (!%p2253_p8)
}
  0x64   : > { %2072 = dma.hbm_to_vmem [thread:$0]  (!%p2499_p11), %s2506_s3, 128, %s318_s29, %s307_s10  }
  0x65   : > { %p2806_p10 = scmp.ne.s32.totalorder %s2797_s13, 0 }
  0x66   : > { %s2557_s22 = sand.u32 (!%p2806_p10), 1, %s2325_s28   ;;  %p2807_p0 = scmp.ne.s32.totalorder (!%p2806_p10), %s2795_s11, 0 }
  0x67   : > { %326 = sbr.rel (%p2806_p10) target bundleno = 3322 (0xcfa), region = 52  ;;  %s2560_s6 = sshll.u32 (!%p2806_p10), %s2557_s22, 3 }
  0x68   : > { %s329_s24 = scalar_lea.sflag (!%p2806_p10), [#allocation3], %s2557_s22  ;;  %s332_s14 = scalar_lea.vmem (!%p2806_p10), [#allocation2], %s2560_s6 }
  0x6c   : > { %2300 = dma.done.wait (%p2807_p0), %s329_s24, 128  }
  0x6d   : > { %2302 = vsyncadd (%p2807_p0), %s329_s24, 4294967168  ;;  %s337_s3 = sand.u32 1, %s2418_s9   ;;  %s341_s26 = scalar_lea.vmem [#allocation5], %s2560_s6 }
  0x6e   : > { %s338_s13 = scalar_lea.sflag [#allocation6], %s337_s3 }
  0x6f   : > { %2304 = dma.done.wait (%p2807_p0), %s338_s13, 128  }
  0x70   : > { %2306 = vsyncadd (%p2807_p0), %s338_s13, 4294967168  ;;  %p2808_p8 = scmp.eq.s32.totalorder %s2418_s9, 0 }
  0x72   : > { %2308 = dma.done.wait (%p2808_p8), [#allocation6], 512   ;;  %p2809_p11 = pmov %p2808_p8 }
  0x73   : > { %p2810_p2 = pmov %p2808_p8 }
  0x74   : > { %2310 = vsyncadd (%p2809_p11), [#allocation6], 4294966784 }
  0x75   : > { %2312 = dma.done.wait (%p2810_p2), [#allocation9], 512   ;;  %p2811_p6 = pmov %p2810_p2 }
  0x76   : > { %v2341_v0 = vmov 0.0   ;;  %vm2342_vm0 = vmmov 0   ;;  %v392_v1 = vld [vmem:[%s2778_s2 + $0x18] sm:$0xff]  ;;  %v391_v3 = vld [vmem:[%s2778_s2 + $0x10] sm:$0xff]  ;;  %v390_v5 = vld [vmem:[%s2778_s2 + $0x8] sm:$0xff]  ;;  %vm393_vm1 = vcmask 261120   ;;  %v747_v63 = vlaneseq }
  0x77   : > { %2314 = vsyncadd (%p2811_p6), [#allocation9], 4294966784  ;;  %1947 = vmatprep.subr.mxu0 %v2341_v0  ;;  %1958 = vmatprep.subr.mxu1 %v2341_v0  ;;  %v470_v2 = vld [vmem:[#allocation7 + $0x18] sm:$0xff]  ;;  %v469_v4 = vld [vmem:[#allocation7 + $0x10] sm:$0xff]  ;;  %vm560_vm2 = vcmask 523264   ;;  %s2343_s11 = smov 96  }
  0x78   : > { %1955 = vmatprep.mubr.msk.f32.mxu0 %vm2342_vm0, %v2341_v0  ;;  %1966 = vmatprep.mubr.msk.f32.mxu1 %vm2342_vm0, %v2341_v0  ;;  %v468_v6 = vld [vmem:[#allocation7 + $0x8] sm:$0xff]  ;;  %v389_v7 = vld [vmem:[%s2778_s2] sm:$0xff]  ;;  %v388_v10 = vld [vmem:[%s341_s26] sm:$0xff]  ;;  %vm581_vm3 = vcmask 1040384   ;;  %vm583_vm4 = vcmask 1041408   ;;  %vm664_vm5 = vcmask 15360  }
  0x79   : > { %1948 = vmatpush3.msra.mxu0 %v392_v1  ;;  %1959 = vmatpush3.msra.mxu1 %v470_v2  ;;  %v467_v8 = vld [vmem:[#allocation7] sm:$0xff]  ;;  %v588_v11 = vld [vmem:[%s2780_s4 + $0x18] sm:$0xff]  ;;  %v587_v12 = vld [vmem:[%s2780_s4 + $0x10] sm:$0xff]  ;;  %v748_v1 = vshrl.u32 %v747_v63, 7  ;;  %vm777_vm6 = vcmask 64512   ;;  %s2344_s19 = smov 32  }
  0x7a   : > { %1949 = vmatprep.subr.mxu0 %v2341_v0  ;;  %1960 = vmatprep.subr.mxu1 %v2341_v0  ;;  %v387_v9 = vld [vmem:[%s332_s14] sm:$0xff]  ;;  %s2345_s17 = smov 120   ;;  %s2346_s20 = smov 112  }
  0x7b   : > { %1950 = vmatpush3.msra.mxu0 %v391_v3  ;;  %1961 = vmatpush3.msra.mxu1 %v469_v4  ;;  %v586_v13 = vld [vmem:[%s2780_s4 + $0x8] sm:$0xff]  ;;  %v585_v24 = vld [vmem:[%s2780_s4] sm:$0xff]  ;;  %v754_v2 = vsub.s32 1, %v748_v1  ;;  %v759_v3 = vsub.s32 2, %v748_v1  ;;  %v749_v4 = vsub.s32 0, %v748_v1  ;;  %s2347_s15 = smov 88  }
  0x7c   : > { %1951 = vmatprep.subr.mxu0 %v2341_v0  ;;  %1962 = vmatprep.subr.mxu1 %v2341_v0  ;;  %v663_v54 = vld [vmem:[%s2781_s5] sm:$0x3]  ;;  %s2348_s18 = smov 80   ;;  %s2349_s23 = smov 104  }
  0x7d   : > { %1952 = vmatpush3.msra.mxu0 %v390_v5  ;;  %1963 = vmatpush3.msra.mxu1 %v468_v6  ;;  %s2350_s24 = smov 72   ;;  %s1903_s14 = sshll.u32 %s2418_s9, 7 }
  0x7e   : > { %1953 = vmatprep.subr.mxu0 %v2341_v0  ;;  %1964 = vmatprep.subr.mxu1 %v2341_v0  ;;  %s386_s3 = scalar_lea.vmem [#allocation10], %s2560_s6  ;;  %s2738_s29 = scalar_lea.hbm %s2784_s8, %s1903_s14 }
  0x7f   : > { %1954 = vmatpush3.msra.mxu0 %v389_v7  ;;  %1965 = vmatpush3.msra.mxu1 %v467_v8  ;;  %s1752_s13 = sshll.u32 %s386_s3, 4  ;;  %s1739_s10 = scalar_lea.sflag [#allocation4], %s2557_s22  ;;  %s1753_s13 = int_to_ptr.vmem [resolvable:$true] %s1752_s13 }
  0x80   : > { %1956 = vmatmul.mubr.msk.f32.vlgmr.msra.gmra.mxu0 %vm393_vm1, %v387_v9  ;;  %1967 = vmatmul.mubr.msk.f32.vlgmr.msra.gmra.mxu1 %vm393_vm1, %v388_v10  ;;  %p2812_p7 = scmp.ne.s32.totalorder %s2803_s16, 0  ;;  %s2351_s9 = smov [#allocation10]  }
  0x81   : > { %1969 = vmatprep.subr.mxu0 %v2341_v0  ;;  %1977 = vmatprep.mubr.msk.f32.mxu0 %vm2342_vm0, %v2341_v0  ;;  %s2261_s6 = sshll.u32 %s2351_s9, 4  ;;  %s2262_s6 = int_to_ptr.vmem [resolvable:$false] %s2261_s6 }
  0x82   : > { %1980 = vmatprep.subr.mxu1 %v2341_v0  ;;  %1982 = vmatprep.mubr.msk.f32.mxu1 %vm2342_vm0, %v2341_v0  ;;  %p2264_p5 = scmp.lt.s32.totalorder %s1753_s13, %s2262_s6 }
  0x83   : > { %1970 = vmatpush3.msra.mxu0 %v588_v11  ;;  %1981 = vmatpush3.msk.msra.mxu1 %vm583_vm4, %v663_v54 }
  0x84   : > { %1971 = vmatprep.subr.mxu0 %v2341_v0  ;;  %1985 = vmatprep.subr.mxu1 %v2341_v0 }
  0x85   : > { %1972 = vmatpush3.msra.mxu0 %v587_v12 }
  0x86   : > { %1973 = vmatprep.subr.mxu0 %v2341_v0 }
  0x87   : > { %1974 = vmatpush3.msra.mxu0 %v586_v13 }
  0x88   : > { %1975 = vmatprep.subr.mxu0 %v2341_v0 }
  0x89   : > { %1976 = vmatpush3.msra.mxu0 %v585_v24 }
  0x8a   : > { %1990 = vmatprep.subr.mxu0 %v2341_v0 }
 0x140   : > { %v2630_v14 = vpop.f32.mrf.mxu0  ;;  %v2632_v15 = vpop.f32.mrf.mxu1 }
 0x141   : > { %v561_v16 = vsel %vm560_vm2, %v2632_v15, -inf  ;;  %v568_v17 = vsel %vm560_vm2, %v2632_v15, 0.0  ;;  %v551_v35 = vsel %vm393_vm1, %v2630_v14, 0.0  ;;  %v544_v37 = vsel %vm393_vm1, %v2630_v14, -inf }
 0x142   : > { %v562_v18 = vrot.slane %v561_v16, 4  ;;  %v569_v19 = vrot.slane %v568_v17, 4  ;;  %v1968_v20 = vpop.f32.mrf.mxu1  ;;  %v1957_v21 = vpop.f32.mrf.mxu0  ;;  %v552_v36 = vrot.slane %v551_v35, 4  ;;  %v545_v38 = vrot.slane %v544_v37, 4 }
 0x144   : > { %v563_v22 = vmax.f32 %v561_v16, %v562_v18  ;;  %v570_v23 = vadd.f32 %v569_v19, %v568_v17  ;;  %v553_v39 = vadd.f32 %v552_v36, %v551_v35  ;;  %v546_v40 = vmax.f32 %v544_v37, %v545_v38 }
 0x146   : > { %v564_v25 = vrot.slane %v563_v22, 2  ;;  %v571_v26 = vrot.slane %v570_v23, 2  ;;  %v554_v41 = vrot.slane %v553_v39, 2  ;;  %v547_v42 = vrot.slane %v546_v40, 2 }
 0x148   : > { %v565_v27 = vmax.f32 %v563_v22, %v564_v25  ;;  %v572_v28 = vadd.f32 %v571_v26, %v570_v23  ;;  %v555_v43 = vadd.f32 %v554_v41, %v553_v39  ;;  %v548_v44 = vmax.f32 %v546_v40, %v547_v42 }
 0x14a   : > { %v566_v29 = vrot.slane %v565_v27, 1  ;;  %v573_v30 = vrot.slane %v572_v28, 1  ;;  %v556_v45 = vrot.slane %v555_v43, 1  ;;  %v549_v46 = vrot.slane %v548_v44, 1 }
 0x14c   : > { %v574_v31 = vadd.f32 %v573_v30, %v572_v28  ;;  %v567_v32 = vmax.f32 %v565_v27, %v566_v29  ;;  %v557_v47 = vadd.f32 %v556_v45, %v555_v43  ;;  %v550_v48 = vmax.f32 %v548_v44, %v549_v46  ;;  %v766_v28 = vld [vmem:[#allocation8] sm:$0xff] }
 0x14e   : > { %v575_v33 = vmul.f32 0.125, %v574_v31  ;;  %v558_v49 = vmul.f32 0.125, %v557_v47 }
 0x150   : > { %v576_v34 = vadd.f32 %v575_v33, %v567_v32  ;;  %v559_v50 = vadd.f32 %v558_v49, %v550_v48  ;;  %v767_v48 = vld [vmem:[#allocation8 + $0x8] sm:$0xff] }
 0x152   : > { %578 = vrot.lane.b32.xlu0 %v576_v34, %s2343_s11  ;;  %v582_v52 = vsel %vm581_vm3, %v559_v50, %v576_v34 }
 0x1c4   : > { %v579_v51 = vpop.permute.xlu0 %578 }
 0x1c5   : > { %v584_v53 = vsel %vm583_vm4, %v582_v52, %v579_v51 }
 0x1c6   : > { %1978 = vmatmul.mubr.msk.f32.vlgmr.msra.gmra.mxu0 %vm393_vm1, %v584_v53 }
 0x1c7   : > { %1992 = vmatprep.mubr.msk.f32.mxu0 %vm2342_vm0, %v2341_v0 }
 0x286   : > { %v658_v55 = vpop.f32.mrf.mxu0 }
 0x287   : > { %v662_v56 = vmax.f32 %v658_v55, 0.0 }
 0x288   : > { %v1979_v57 = vpop.f32.mrf.mxu0 }
 0x289   : > { %1983 = vmatmul.mubr.msk.f32.vlgmr.msra.gmra.mxu1 %vm664_vm5, %v662_v56 }
 0x28a   : > { %1987 = vmatprep.mubr.msk.f32.mxu1 %vm2342_vm0, %v2341_v0 }
 0x349   : > { %v737_v58 = vpop.f32.mrf.mxu1 }
 0x34a   : > { %v1884_v59 = vmul.f32 -1.442695, %v737_v58 }
 0x34b   : > { %v1984_v60 = vpop.f32.mrf.mxu1 }
 0x34c   : > { %2129 = vpow2.f32 %v1884_v59 }
 0x359   : > { %v2130_v61 = vpop.eup %2129 }
 0x35a   : > { %v744_v62 = vadd.f32 1.0, %v2130_v61  ;;  %v1885_v61 = vld [vmem:[%s2783_s7] ss:$0 sm:$0xff] }
 0x35c   : > { %2131 = vrcp.f32 %v744_v62 }
 0x369   : > { %v2132_v5 = vpop.eup %2131 }
 0x36a   : > { %v760_v6 = vrot.slane %v2132_v5, %v759_v3  ;;  %v755_v7 = vrot.slane %v2132_v5, %v754_v2  ;;  %v750_v8 = vrot.slane %v2132_v5, %v749_v4 }
 0x36c   : > { %762 = vrot.lane.b32.xlu1 %v760_v6, %s2344_s19  ;;  %v2655_v9 = vmul.f32 %v755_v7, %v2632_v15  ;;  %v2660_v10 = vmul.f32 %v750_v8, %v2630_v14  ;;  %v768_v8 = vld [vmem:[#allocation8 + $0x10] sm:$0xff]  ;;  %s2257_s19 = scalar_lea.vmem %s1753_s13, 128 }
 0x36d   : > { %p2258_p12 = scmp.ne.s32.totalorder %s1753_s13, %s2257_s19 }
 0x36e   : > { %1986 = vmatpush3.xpose.msk.msra.mxu1 %vm777_vm6, %v2655_v9 }
 0x36f   : > { %1995 = vmatprep.subr.mxu1 %v2341_v0  ;;  %p2259_p9 = pnand %p2258_p12, %p2812_p7 }
 0x371   : > { %1988 = vmatmul.mubr.msk.f32.vlgmr.msra.gmra.mxu1 %vm777_vm6, %v2660_v10  ;;  %p2260_p13 = pneg %p2259_p9 }
 0x372   : > { %1997 = vmatprep.mubr.msk.f32.mxu1 %vm2342_vm0, %v2341_v0  ;;  %1996 = vmatpush3.msra.mxu1 %v766_v28 }
 0x373   : > { %2005 = vmatprep.subr.mxu1 %v2341_v0 }
 0x3de   : > { %v763_v17 = vpop.permute.xlu1 %762 }
 0x3df   : > { %v2669_v18 = vmul.f32 %v763_v17, %v2632_v15 }
 0x431   : > { %v850_v11 = vpop.f32.mrf.mxu1 }
 0x432   : > { %v854_v12 = vmul.f32 0.17677669, %v850_v11 }
 0x433   : > { %v1989_v13 = vpop.f32.mrf.mxu1 }
 0x434   : > { %v855_v16 = vsel %vm777_vm6, %v854_v12, -inf }
 0x435   : > { %856 = vmax.xlane.f32.xlu0 %v855_v16 }
 0x44b   : > { %867 = vrot.lane.b32.xlu0 %v2669_v18, %s2343_s11 }
 0x44f   : > { %1017 = vrot.lane.b32.xlu0 %v2660_v10, %s2345_s17 }
 0x4be   : > { %v857_v14 = vpop.xlane.xlu0 %856 }
 0x4bf   : > { %v858_v19 = vsub.f32 %v854_v12, %v857_v14 }
 0x4c1   : > { %v859_v20 = vmul.f32 1.442695, %v858_v19 }
 0x4c2   : > { %v868_v21 = vpop.permute.xlu0 %867 }
 0x4c3   : > { %2133 = vpow2.f32 %v859_v20  ;;  %1991 = vmatpush3.msra.mxu0 %v868_v21 }
 0x4c4   : > { %2000 = vmatprep.subr.mxu0 %v2341_v0 }
 0x4c6   : > { %v1018_v27 = vpop.permute.xlu0 %1017 }
 0x4d0   : > { %v2134_v22 = vpop.eup %2133 }
 0x4d1   : > { %v861_v23 = vsel %vm777_vm6, %v2134_v22, 0.0 }
 0x4d2   : > { %862 = vadd.xlane.f32.xlu1 %v861_v23 }
 0x4e3   : > { %1019 = vrot.lane.b32.xlu1 %v2655_v9, %s2345_s17  ;;  %s2263_s17 = scalar_lea.vmem %s2262_s6, 256 }
 0x4e4   : > { %p2265_p1 = scmp.lt.s32.totalorder %s2263_s17, %s2257_s19 }
 0x4e6   : > { %p2266_p3 = por %p2265_p1, %p2264_p5 }
 0x4e8   : > { %p2267_p4 = pnand %p2266_p3, %p2260_p13 }
 0x55b   : > { %v863_v15 = vpop.xlane.xlu1 %862 }
 0x55c   : > { %2135 = vrcp.f32 %v863_v15 }
 0x55f   : > { %v1020_v26 = vpop.permute.xlu1 %1019 }
 0x569   : > { %v2136_v24 = vpop.eup %2135 }
 0x56a   : > { %v865_v25 = vmul.f32 %v2136_v24, %v2134_v22  ;;  %v769_v22 = vld [vmem:[#allocation8 + $0x18] sm:$0xff] }
 0x56c   : > { %1993 = vmatmul.mubr.msk.f32.vlgmr.msra.gmra.mxu0 %vm777_vm6, %v865_v25 }
 0x56d   : > { %2001 = vmatpush3.xpose.msk.msra.mxu0 %vm777_vm6, %v1020_v26  ;;  %2002 = vmatprep.mubr.msk.f32.mxu0 %vm2342_vm0, %v2341_v0 }
 0x56e   : > { %2010 = vmatprep.subr.mxu0 %v2341_v0 }
 0x570   : > { %2003 = vmatmul.mubr.msk.f32.vlgmr.msra.gmra.mxu0 %vm777_vm6, %v1018_v27 }
 0x571   : > { %2012 = vmatprep.mubr.msk.f32.mxu0 %vm2342_vm0, %v2341_v0  ;;  %2011 = vmatpush3.msra.mxu0 %v767_v48 }
 0x572   : > { %2020 = vmatprep.subr.mxu0 %v2341_v0 }
 0x62c   : > { %v939_v29 = vpop.f32.mrf.mxu0 }
 0x62d   : > { %1998 = vmatmul.mubr.msk.f32.vlgmr.msra.gmra.mxu1 %vm777_vm6, %v939_v29 }
 0x62e   : > { %v1994_v30 = vpop.f32.mrf.mxu0  ;;  %2007 = vmatprep.mubr.msk.f32.mxu1 %vm2342_vm0, %v2341_v0 }
 0x630   : > { %v1091_v31 = vpop.f32.mrf.mxu0 }
 0x631   : > { %v1095_v32 = vmul.f32 0.17677669, %v1091_v31 }
 0x632   : > { %v2004_v33 = vpop.f32.mrf.mxu0 }
 0x633   : > { %v1096_v34 = vsel %vm777_vm6, %v1095_v32, -inf }
 0x634   : > { %1097 = vmax.xlane.f32.xlu1 %v1096_v34 }
 0x645   : > { %1259 = vrot.lane.b32.xlu1 %v2655_v9, %s2346_s20 }
 0x649   : > { %1257 = vrot.lane.b32.xlu1 %v2660_v10, %s2346_s20 }
 0x6bd   : > { %v1098_v35 = vpop.xlane.xlu1 %1097 }
 0x6be   : > { %v1099_v36 = vsub.f32 %v1095_v32, %v1098_v35 }
 0x6c0   : > { %v1100_v37 = vmul.f32 1.442695, %v1099_v36 }
 0x6c1   : > { %v1260_v45 = vpop.permute.xlu1 %1259 }
 0x6c2   : > { %2137 = vpow2.f32 %v1100_v37 }
 0x6c5   : > { %v1258_v47 = vpop.permute.xlu1 %1257 }
 0x6cf   : > { %v2138_v38 = vpop.eup %2137 }
 0x6d0   : > { %v1102_v39 = vsel %vm777_vm6, %v2138_v38, 0.0 }
 0x6d1   : > { %1103 = vadd.xlane.f32.xlu0 %v1102_v39 }
 0x6e7   : > { %1107 = vrot.lane.b32.xlu0 %v2669_v18, %s2347_s15 }
 0x6ed   : > { %v1012_v40 = vpop.f32.mrf.mxu1 }
 0x6ee   : > { %v1016_v62 = vadd.f32 %v1885_v61, %v1012_v40 }
 0x6ef   : > { %v1999_v41 = vpop.f32.mrf.mxu1 }
 0x75a   : > { %v1104_v42 = vpop.xlane.xlu0 %1103 }
 0x75b   : > { %2139 = vrcp.f32 %v1104_v42 }
 0x75e   : > { %v1108_v43 = vpop.permute.xlu0 %1107 }
 0x75f   : > { %2006 = vmatpush3.msra.mxu1 %v1108_v43 }
 0x760   : > { %2015 = vmatprep.subr.mxu1 %v2341_v0 }
 0x768   : > { %v2140_v44 = vpop.eup %2139 }
 0x769   : > { %v1106_v46 = vmul.f32 %v2140_v44, %v2138_v38 }
 0x76b   : > { %2008 = vmatmul.mubr.msk.f32.vlgmr.msra.gmra.mxu1 %vm777_vm6, %v1106_v46 }
 0x76c   : > { %2016 = vmatpush3.xpose.msk.msra.mxu1 %vm777_vm6, %v1260_v45  ;;  %2017 = vmatprep.mubr.msk.f32.mxu1 %vm2342_vm0, %v2341_v0 }
 0x76d   : > { %2025 = vmatprep.subr.mxu1 %v2341_v0 }
 0x76f   : > { %2018 = vmatmul.mubr.msk.f32.vlgmr.msra.gmra.mxu1 %vm777_vm6, %v1258_v47 }
 0x770   : > { %2027 = vmatprep.mubr.msk.f32.mxu1 %vm2342_vm0, %v2341_v0  ;;  %2026 = vmatpush3.msra.mxu1 %v768_v8 }
 0x771   : > { %2035 = vmatprep.subr.mxu1 %v2341_v0 }
 0x82b   : > { %v1179_v49 = vpop.f32.mrf.mxu1 }
 0x82c   : > { %2013 = vmatmul.mubr.msk.f32.vlgmr.msra.gmra.mxu0 %vm777_vm6, %v1179_v49 }
 0x82d   : > { %v2009_v50 = vpop.f32.mrf.mxu1  ;;  %2022 = vmatprep.mubr.msk.f32.mxu0 %vm2342_vm0, %v2341_v0 }
 0x82f   : > { %v1331_v51 = vpop.f32.mrf.mxu1 }
 0x830   : > { %v1335_v52 = vmul.f32 0.17677669, %v1331_v51 }
 0x831   : > { %v2019_v53 = vpop.f32.mrf.mxu1 }
 0x832   : > { %v1336_v54 = vsel %vm777_vm6, %v1335_v52, -inf }
 0x833   : > { %1337 = vmax.xlane.f32.xlu0 %v1336_v54 }
 0x849   : > { %1347 = vrot.lane.b32.xlu0 %v2669_v18, %s2348_s18 }
 0x84d   : > { %1497 = vrot.lane.b32.xlu0 %v2660_v10, %s2349_s23 }
 0x8bc   : > { %v1338_v55 = vpop.xlane.xlu0 %1337 }
 0x8bd   : > { %v1339_v56 = vsub.f32 %v1335_v52, %v1338_v55 }
 0x8bf   : > { %v1340_v57 = vmul.f32 1.442695, %v1339_v56 }
 0x8c0   : > { %v1348_v58 = vpop.permute.xlu0 %1347 }
 0x8c1   : > { %2141 = vpow2.f32 %v1340_v57  ;;  %2021 = vmatpush3.msra.mxu0 %v1348_v58 }
 0x8c2   : > { %2030 = vmatprep.subr.mxu0 %v2341_v0 }
 0x8c4   : > { %v1498_v7 = vpop.permute.xlu0 %1497 }
 0x8ce   : > { %v2142_v59 = vpop.eup %2141 }
 0x8cf   : > { %v1342_v60 = vsel %vm777_vm6, %v2142_v59, 0.0 }
 0x8d0   : > { %1343 = vadd.xlane.f32.xlu1 %v1342_v60 }
 0x8e1   : > { %1499 = vrot.lane.b32.xlu1 %v2655_v9, %s2349_s23 }
 0x8ec   : > { %v1252_v63 = vpop.f32.mrf.mxu0 }
 0x8ed   : > { %v1256_v1 = vadd.f32 %v1252_v63, %v1016_v62 }
 0x8ee   : > { %v2014_v2 = vpop.f32.mrf.mxu0 }
 0x959   : > { %v1344_v3 = vpop.xlane.xlu1 %1343 }
 0x95a   : > { %2143 = vrcp.f32 %v1344_v3 }
 0x95d   : > { %v1500_v6 = vpop.permute.xlu1 %1499 }
 0x967   : > { %v2144_v4 = vpop.eup %2143 }
 0x968   : > { %v1346_v5 = vmul.f32 %v2144_v4, %v2142_v59 }
 0x96a   : > { %2023 = vmatmul.mubr.msk.f32.vlgmr.msra.gmra.mxu0 %vm777_vm6, %v1346_v5 }
 0x96b   : > { %2031 = vmatpush3.xpose.msk.msra.mxu0 %vm777_vm6, %v1500_v6  ;;  %2032 = vmatprep.mubr.msk.f32.mxu0 %vm2342_vm0, %v2341_v0 }
 0x96c   : > { %2040 = vmatprep.subr.mxu0 %v2341_v0 }
 0x96e   : > { %2033 = vmatmul.mubr.msk.f32.vlgmr.msra.gmra.mxu0 %vm777_vm6, %v1498_v7 }
 0x96f   : > { %2042 = vmatprep.mubr.msk.f32.mxu0 %vm2342_vm0, %v2341_v0  ;;  %2041 = vmatpush3.msra.mxu0 %v769_v22 }
 0xa2a   : > { %v1419_v9 = vpop.f32.mrf.mxu0 }
 0xa2b   : > { %2028 = vmatmul.mubr.msk.f32.vlgmr.msra.gmra.mxu1 %vm777_vm6, %v1419_v9 }
 0xa2c   : > { %v2024_v10 = vpop.f32.mrf.mxu0  ;;  %2037 = vmatprep.mubr.msk.f32.mxu1 %vm2342_vm0, %v2341_v0 }
 0xa2e   : > { %v1571_v11 = vpop.f32.mrf.mxu0 }
 0xa2f   : > { %v1575_v12 = vmul.f32 0.17677669, %v1571_v11 }
 0xa30   : > { %v2034_v13 = vpop.f32.mrf.mxu0 }
 0xa31   : > { %v1576_v16 = vsel %vm777_vm6, %v1575_v12, -inf }
 0xa32   : > { %1577 = vmax.xlane.f32.xlu1 %v1576_v16 }
 0xabb   : > { %v1578_v17 = vpop.xlane.xlu1 %1577 }
 0xabc   : > { %v1579_v14 = vsub.f32 %v1575_v12, %v1578_v17 }
 0xabe   : > { %v1580_v19 = vmul.f32 1.442695, %v1579_v14 }
 0xac0   : > { %2145 = vpow2.f32 %v1580_v19 }
 0xacd   : > { %v2146_v20 = vpop.eup %2145 }
 0xace   : > { %v1582_v21 = vsel %vm777_vm6, %v2146_v20, 0.0 }
 0xacf   : > { %1583 = vadd.xlane.f32.xlu0 %v1582_v21 }
 0xae5   : > { %1587 = vrot.lane.b32.xlu0 %v2669_v18, %s2350_s24 }
 0xaeb   : > { %v1492_v0 = vpop.f32.mrf.mxu1 }
 0xaec   : > { %v1496_v23 = vadd.f32 %v1492_v0, %v1256_v1 }
 0xaed   : > { %v2029_v15 = vpop.f32.mrf.mxu1 }
 0xb58   : > { %v1584_v24 = vpop.xlane.xlu0 %1583 }
 0xb59   : > { %2147 = vrcp.f32 %v1584_v24 }
 0xb5c   : > { %v1588_v25 = vpop.permute.xlu0 %1587 }
 0xb5d   : > { %2036 = vmatpush3.msra.mxu1 %v1588_v25 }
 0xb66   : > { %v2148_v26 = vpop.eup %2147 }
 0xb67   : > { %v1586_v27 = vmul.f32 %v2148_v26, %v2146_v20 }
 0xb69   : > { %2038 = vmatmul.mubr.msk.f32.vlgmr.msra.gmra.mxu1 %vm777_vm6, %v1586_v27 }
 0xc29   : > { %v1659_v28 = vpop.f32.mrf.mxu1 }
 0xc2a   : > { %2043 = vmatmul.mubr.msk.f32.vlgmr.msra.gmra.mxu0 %vm777_vm6, %v1659_v28 }
 0xc2b   : > { %v2039_v18 = vpop.f32.mrf.mxu1 }
 0xcea   : > { %v1732_v29 = vpop.f32.mrf.mxu0 }
 0xceb   : > { %v1736_v30 = vadd.f32 %v1732_v29, %v1496_v23 }
 0xcec   : > { %v2044_v31 = vpop.f32.mrf.mxu0 }
 0xced   : > { %1737 = vst.msk [vmem:[%s386_s3] sm:$0xff] %vm393_vm1, %v1736_v30 }
 0xcee   : > { %2270 = shalt.err (!%p2267_p4)
}
 0xcef   : > { %s2271_s20 = scalar_lea.hbm %s2738_s29, 128  ;;  %s2275_s18 = scalar_lea.hbm %s2784_s8, 256 }
 0xcf0   : > { %p2272_p10 = scmp.ne.s32.totalorder %s2738_s29, %s2271_s20  ;;  %p2276_p11 = scmp.lt.s32.totalorder %s2738_s29, %s2784_s8 }
 0xcf1   : > { %p2277_p2 = scmp.lt.s32.totalorder %s2275_s18, %s2271_s20 }
 0xcf2   : > { %p2273_p0 = pnand %p2272_p10, %p2812_p7 }
 0xcf3   : > { %p2278_p6 = por %p2277_p2, %p2276_p11 }
 0xcf4   : > { %p2274_p8 = pneg %p2273_p0 }
 0xcf6   : > { %p2279_p12 = pnand %p2278_p6, %p2274_p8 }
 0xcf8   : > { %2282 = shalt.err (!%p2279_p12)
}
 0xcf9   : > { %2057 = dma.vmem_to_hbm [thread:$0]  (%p2812_p7), %s1753_s13, 128, %s2738_s29, %s1739_s10  }
 0xcfa PF: > { %s1764_s21 = sand.u32 1, %s2321_s27   ;;  %p2813_p9 = scmp.ne.s32.totalorder %s2796_s12, 0 }
 0xcfb   : > { %p2814_p13 = scmp.ge.s32.totalorder %s2333_s30, 2  ;;  %s1765_s24 = scalar_lea.sflag [#allocation4], %s1764_s21 }
 0xcfd   : > { %p2074_p5 = pnand %p2814_p13, %p2813_p9 }
 0xcff   : > { %p2075_p1 = pneg %p2074_p5 }
 0xd01   : > { %2316 = dma.done.wait (%p2075_p1), %s1765_s24, 128  }
 0xd02   : > { %2318 = vsyncadd (%p2075_p1), %s1765_s24, 4294967168  ;;  %s2815_s30 = sld [smem:[#allocation17_spill]]  ;;  %s2818_s27 = smov %s2325_s28 }
 0xd03   : > { %s2816_s14 = sld [smem:[#allocation16_spill]] }
 0xd04   : > { %s2817_s29 = sld [smem:[#allocation18_spill]] }
 0xd08   : > { %p25_p3 = scmp.ge.s32.totalorder %s2815_s30, 4  }
 0xd09   : > { %s2819_s28 = smov %s2816_s14 }
 0xd0a   :  { %27 = sbr.rel (!%p25_p3) target bundleno = 11 (0xb), region = 118 }
 0xd0f   :  { %1770 = vsyncpa [#allocation3], 1 }
 0xd10   :  { %1772 = vsyncpa [#allocation3 + $0x1], 1 }
 0xd11   :  { %1773 = vsyncpa [#allocation6], 1 }
 0xd12   :  { %1775 = vsyncpa [#allocation6 + $0x1], 1 }
 0xd13   :  { %1776 = vsyncpa [#allocation9], 1 }
 0xd14   :  { %1777 = vsyncpa [#allocation4], 1 }
 0xd15   :  { %1779 = vsyncpa [#allocation4 + $0x1], 1 }

</bundles_post_ra>
